<compile_context>
chip_gen: v6e
topology: v6e:2x2x1
jax: 0.10.0
libtpu: 0.0.40
codegen_flags: <defaults>
</compile_context>

<pallas_src>
import jax
import jax.numpy as jnp
from jax.experimental import pallas as pl
from jax.experimental.pallas import tpu as pltpu


LANE = 128
SUBLANE = 8


def _round_up(x, m):
    return (x + m - 1) // m * m


def _choose_tile_b(B, tile_b_max=1024, min_grid_steps=2):
    """Adaptive batch tile.

    - Large B: tiles of ~tile_b_max rows (amortize per-step overhead).
    - B >= 16: at least `min_grid_steps` grid steps so the "parallel" batch
      axis can shard across v7x's two TensorCores.
    - Single-tile case: tile_b = B exactly (full-dim block is always legal),
      so no batch padding at all.
    """
    n_tiles = pl.cdiv(B, tile_b_max)
    if B >= 2 * SUBLANE:
        n_tiles = max(n_tiles, min_grid_steps)
    if n_tiles <= 1:
        return B
    return _round_up(pl.cdiv(B, n_tiles), SUBLANE)


def encoder_kernel(x_ref, w1_ref, b1_ref, w2_ref, b2_ref, w3_ref, b3_ref, o_ref):
    # x arrives as f32 straight from HBM (no wrapper pad/cast pass); cast to the
    # compute dtype (bf16) on the VPU just before the layer-1 MXU dot.
    x = x_ref[...].astype(w1_ref.dtype)                       # (tile_b, 1100)
    # Layer 1: Linear(1100 -> 256) + ReLU (f32 accumulation on the MXU).
    h1 = jnp.dot(x, w1_ref[...], preferred_element_type=jnp.float32) + b1_ref[...]
    h1 = jnp.maximum(h1, 0.0).astype(w2_ref.dtype)
    # Layer 2: Linear(256 -> 64[pad 128]) + ReLU.
    h2 = jnp.dot(h1, w2_ref[...], preferred_element_type=jnp.float32) + b2_ref[...]
    h2 = jnp.maximum(h2, 0.0).astype(w3_ref.dtype)
    # Layer 3: Linear(64 -> 32[pad 128]), no activation. Lane-dense 128-wide store.
    o_ref[...] = (
        jnp.dot(h2, w3_ref[...], preferred_element_type=jnp.float32) + b3_ref[...]
    ).astype(o_ref.dtype)


def encoder_forward(x, w1, b1, w2, b2, w3, b3, *, tile_b_max=1024,
                    compute_dtype=jnp.bfloat16, out_dtype=jnp.float32):
    """x: [B, 1100] f32; weights stored [in, out] (PyTorch W.T); biases [*, out].

    Set out_dtype=jnp.bfloat16 to halve output-store traffic if the consumer
    tolerates bf16; default f32 matches the PyTorch module's output dtype.
    """
    B, d_in = x.shape
    h1_dim = w1.shape[1]                 # 256 (already lane-aligned)
    h2_dim = w2.shape[1]                 # 64
    enc_dim = w3.shape[1]                # 32

    h2_pad = _round_up(h2_dim, LANE)     # 64  -> 128
    n_pad = _round_up(enc_dim, LANE)     # 32  -> 128 (lane-dense output store)

    tile_b = _choose_tile_b(B, tile_b_max)
    grid = (pl.cdiv(B, tile_b),)

    def pad2(a, rows, cols):
        return jnp.pad(a, ((0, rows - a.shape[0]), (0, cols - a.shape[1])))

    # Weights/biases are tiny (<0.6 MB total); padding + casting them is
    # negligible next to the x stream, and zero padding is numerically exact.
    w1_c = w1.astype(compute_dtype)                                 # (1100, 256)
    w2_p = pad2(w2, h1_dim, h2_pad).astype(compute_dtype)           # (256, 128)
    w3_p = pad2(w3, h2_pad, n_pad).astype(compute_dtype)            # (128, 128)
    b1_r = b1.reshape(1, -1).astype(jnp.float32)                    # (1, 256)
    b2_p = pad2(b2.reshape(1, -1), 1, h2_pad).astype(jnp.float32)   # (1, 128)
    b3_p = pad2(b3.reshape(1, -1), 1, n_pad).astype(jnp.float32)    # (1, 128)

    weight_bytes = sum(int(a.size) * a.dtype.itemsize
                       for a in (w1_c, w2_p, w3_p, b1_r, b2_p, b3_p))
    cost = pl.CostEstimate(
        flops=2 * B * (d_in * h1_dim + h1_dim * h2_pad + h2_pad * n_pad),
        transcendentals=0,
        bytes_accessed=int(x.size) * x.dtype.itemsize               # f32 x stream
        + weight_bytes
        + B * n_pad * jnp.dtype(out_dtype).itemsize,
    )

    out_padded = pl.pallas_call(
        encoder_kernel,
        out_shape=jax.ShapeDtypeStruct((B, n_pad), out_dtype),
        grid_spec=pl.GridSpec(
            grid=grid,
            in_specs=[
                # x tile streams with the grid (double-buffered by Pallas);
                # last dim == full array dim (1100), so no K padding needed.
                pl.BlockSpec((tile_b, d_in), lambda i: (i, 0)),
                # Weights / biases: constant block index -> resident in VMEM,
                # DMA'd once, never re-fetched across grid steps.
                pl.BlockSpec((d_in, h1_dim), lambda i: (0, 0)),
                pl.BlockSpec((1, h1_dim), lambda i: (0, 0)),
                pl.BlockSpec((h1_dim, h2_pad), lambda i: (0, 0)),
                pl.BlockSpec((1, h2_pad), lambda i: (0, 0)),
                pl.BlockSpec((h2_pad, n_pad), lambda i: (0, 0)),
                pl.BlockSpec((1, n_pad), lambda i: (0, 0)),
            ],
            out_specs=pl.BlockSpec((tile_b, n_pad), lambda i: (i, 0)),
        ),
        compiler_params=pltpu.CompilerParams(
            dimension_semantics=("parallel",),   # shard batch tiles across TCs
            vmem_limit_bytes=32 * 1024 * 1024,   # > worst case ~12 MiB; OK on v5e/v6e/v7x
        ),
        cost_estimate=cost,
    )(x, w1_c, b1_r, w2_p, b2_p, w3_p, b3_p)

    # Only the padded columns are sliced off; rows are exact (no batch padding).
    return out_padded[:, :enc_dim]


def init_linear(key, fan_in, fan_out):
    """Deterministic init mimicking PyTorch nn.Linear default (uniform +-1/sqrt(fan_in))."""
    kw, kb = jax.random.split(key)
    bound = 1.0 / jnp.sqrt(jnp.float32(fan_in))
    w = jax.random.uniform(kw, (fan_in, fan_out), jnp.float32, -bound, bound)  # [in, out]
    b = jax.random.uniform(kb, (1, fan_out), jnp.float32, -bound, bound)
    return w, b


def reference_forward_f32(x, w1, b1, w2, b2, w3, b3):
    h1 = jnp.maximum(x @ w1 + b1, 0.0)
    h2 = jnp.maximum(h1 @ w2 + b2, 0.0)
    return h2 @ w3 + b3


def reference_forward_bf16(x, w1, b1, w2, b2, w3, b3):
    """Matched-precision reference (bf16 operands, f32 accumulation/biases)."""
    cd = jnp.bfloat16
    h1 = jnp.dot(x.astype(cd), w1.astype(cd), preferred_element_type=jnp.float32) + b1
    h1 = jnp.maximum(h1, 0.0).astype(cd)
    h2 = jnp.dot(h1, w2.astype(cd), preferred_element_type=jnp.float32) + b2
    h2 = jnp.maximum(h2, 0.0).astype(cd)
    return jnp.dot(h2, w3.astype(cd), preferred_element_type=jnp.float32) + b3


if __name__ == "__main__":
    input_dim = 1100
    encoding_dim = 32
    batch = 2

    key = jax.random.PRNGKey(0)
    kx, k1, k2, k3, kx2 = jax.random.split(key, 5)

    x = jax.random.normal(kx, (batch, input_dim), jnp.float32)
    w1, b1 = init_linear(k1, input_dim, 256)
    w2, b2 = init_linear(k2, 256, 64)
    w3, b3 = init_linear(k3, 64, encoding_dim)

    # Small-batch run (single grid step, tile_b == B exactly).
    out = encoder_forward(x, w1, b1, w2, b2, w3, b3)
    out = jax.block_until_ready(out)
    assert out.shape == (batch, encoding_dim), out.shape

    ref_matched = reference_forward_bf16(x, w1, b1, w2, b2, w3, b3)
    ref_f32 = reference_forward_f32(x, w1, b1, w2, b2, w3, b3)
    assert jnp.allclose(out, ref_matched, atol=2e-3, rtol=2e-3), "mismatch vs bf16 reference"
    assert jnp.allclose(out, ref_f32, atol=5e-2, rtol=5e-2), "mismatch vs f32 reference"

    # Larger batch to exercise the multi-tile (pipelined, >=2-step) grid path.
    xb = jax.random.normal(kx2, (640, input_dim), jnp.float32)
    outb = encoder_forward(xb, w1, b1, w2, b2, w3, b3)
    outb = jax.block_until_ready(outb)
    refb = reference_forward_bf16(xb, w1, b1, w2, b2, w3, b3)
    assert outb.shape == (640, encoding_dim), outb.shape
    assert jnp.allclose(outb, refb, atol=2e-3, rtol=2e-3), "mismatch vs bf16 reference (tiled)"

    print("KERNEL_OK")
</pallas_src>

<mosaic_0001>
module attributes {stable_mosaic.version = 11 : i64} {
  func.func @encoder_kernel(%arg0: i32, %arg1: memref<2x1100xf32, #tpu.memory_space<vmem>>, %arg2: memref<1100x256xbf16, #tpu.memory_space<vmem>>, %arg3: memref<1x256xf32, #tpu.memory_space<vmem>>, %arg4: memref<256x128xbf16, #tpu.memory_space<vmem>>, %arg5: memref<1x128xf32, #tpu.memory_space<vmem>>, %arg6: memref<128x128xbf16, #tpu.memory_space<vmem>>, %arg7: memref<1x128xf32, #tpu.memory_space<vmem>>, %arg8: memref<2x128xf32, #tpu.memory_space<vmem>>) attributes {dimension_semantics = [#tpu.dimension_semantics<parallel>], iteration_bounds = array<i64: 1>, scalar_prefetch = 0 : i64, scratch_operands = 0 : i64, tpu.core_type = #tpu.core_type<tc>, window_params = [{transform_indices = @transform_0, window_bounds = array<i64: 2, 1100>}, {pipeline_mode = #tpu.pipeline_mode<synchronous>, transform_indices = @transform_1, window_bounds = array<i64: 1100, 256>}, {pipeline_mode = #tpu.pipeline_mode<synchronous>, transform_indices = @transform_2, window_bounds = array<i64: 1, 256>}, {pipeline_mode = #tpu.pipeline_mode<synchronous>, transform_indices = @transform_3, window_bounds = array<i64: 256, 128>}, {pipeline_mode = #tpu.pipeline_mode<synchronous>, transform_indices = @transform_4, window_bounds = array<i64: 1, 128>}, {pipeline_mode = #tpu.pipeline_mode<synchronous>, transform_indices = @transform_5, window_bounds = array<i64: 128, 128>}, {pipeline_mode = #tpu.pipeline_mode<synchronous>, transform_indices = @transform_6, window_bounds = array<i64: 1, 128>}, {transform_indices = @transform_7, window_bounds = array<i64: 2, 128>}]} {
    %c0 = arith.constant 0 : index
    %c0_0 = arith.constant 0 : index
    %0 = vector.load %arg1[%c0, %c0_0] : memref<2x1100xf32, #tpu.memory_space<vmem>>, vector<2x1100xf32>
    %1 = arith.truncf %0 : vector<2x1100xf32> to vector<2x1100xbf16>
    %c0_1 = arith.constant 0 : index
    %c0_2 = arith.constant 0 : index
    %2 = vector.load %arg2[%c0_1, %c0_2] : memref<1100x256xbf16, #tpu.memory_space<vmem>>, vector<1100x256xbf16>
    %cst = arith.constant dense<0.000000e+00> : vector<2x256xf32>
    %3 = tpu.matmul %1, %2, %cst {dimension_numbers = #tpu.dot_dimension_numbers<[1], [0], [0], [1], [0, 0, 1, 1], [], []>} : vector<2x1100xbf16>, vector<1100x256xbf16>, vector<2x256xf32> -> vector<2x256xf32>
    %c0_3 = arith.constant 0 : index
    %c0_4 = arith.constant 0 : index
    %4 = vector.load %arg3[%c0_3, %c0_4] : memref<1x256xf32, #tpu.memory_space<vmem>>, vector<1x256xf32>
    %5 = vector.broadcast %4 : vector<1x256xf32> to vector<2x256xf32>
    %6 = arith.addf %3, %5 : vector<2x256xf32>
    %cst_5 = arith.constant 0.000000e+00 : f32
    %7 = vector.broadcast %cst_5 : f32 to vector<2x256xf32>
    %8 = arith.maximumf %6, %7 : vector<2x256xf32>
    %9 = arith.truncf %8 : vector<2x256xf32> to vector<2x256xbf16>
    %c0_6 = arith.constant 0 : index
    %c0_7 = arith.constant 0 : index
    %10 = vector.load %arg4[%c0_6, %c0_7] : memref<256x128xbf16, #tpu.memory_space<vmem>>, vector<256x128xbf16>
    %cst_8 = arith.constant dense<0.000000e+00> : vector<2x128xf32>
    %11 = tpu.matmul %9, %10, %cst_8 {dimension_numbers = #tpu.dot_dimension_numbers<[1], [0], [0], [1], [0, 0, 1, 1], [], []>} : vector<2x256xbf16>, vector<256x128xbf16>, vector<2x128xf32> -> vector<2x128xf32>
    %c0_9 = arith.constant 0 : index
    %c0_10 = arith.constant 0 : index
    %12 = vector.load %arg5[%c0_9, %c0_10] : memref<1x128xf32, #tpu.memory_space<vmem>>, vector<1x128xf32>
    %13 = vector.broadcast %12 : vector<1x128xf32> to vector<2x128xf32>
    %14 = arith.addf %11, %13 : vector<2x128xf32>
    %cst_11 = arith.constant 0.000000e+00 : f32
    %15 = vector.broadcast %cst_11 : f32 to vector<2x128xf32>
    %16 = arith.maximumf %14, %15 : vector<2x128xf32>
    %17 = arith.truncf %16 : vector<2x128xf32> to vector<2x128xbf16>
    %c0_12 = arith.constant 0 : index
    %c0_13 = arith.constant 0 : index
    %18 = vector.load %arg6[%c0_12, %c0_13] : memref<128x128xbf16, #tpu.memory_space<vmem>>, vector<128x128xbf16>
    %cst_14 = arith.constant dense<0.000000e+00> : vector<2x128xf32>
    %19 = tpu.matmul %17, %18, %cst_14 {dimension_numbers = #tpu.dot_dimension_numbers<[1], [0], [0], [1], [0, 0, 1, 1], [], []>} : vector<2x128xbf16>, vector<128x128xbf16>, vector<2x128xf32> -> vector<2x128xf32>
    %c0_15 = arith.constant 0 : index
    %c0_16 = arith.constant 0 : index
    %20 = vector.load %arg7[%c0_15, %c0_16] : memref<1x128xf32, #tpu.memory_space<vmem>>, vector<1x128xf32>
    %21 = vector.broadcast %20 : vector<1x128xf32> to vector<2x128xf32>
    %22 = arith.addf %19, %21 : vector<2x128xf32>
    %c0_17 = arith.constant 0 : index
    %c0_18 = arith.constant 0 : index
    %23 = vector.load %arg8[%c0_17, %c0_18] : memref<2x128xf32, #tpu.memory_space<vmem>>, vector<2x128xf32>
    tpu.vector_store %arg8[%c0_17, %c0_18], %22 {strides = array<i32>} : memref<2x128xf32, #tpu.memory_space<vmem>>, vector<2x128xf32>,
    return
  }
  func.func @transform_0(%arg0: i32) -> (i32, i32) {
    %c0_i32 = arith.constant 0 : i32
    %c0_i32_0 = arith.constant 0 : i32
    return %arg0, %c0_i32 : i32, i32
  }
  func.func @transform_1(%arg0: i32) -> (i32, i32) {
    %c0_i32 = arith.constant 0 : i32
    %c0_i32_0 = arith.constant 0 : i32
    %c0_i32_1 = arith.constant 0 : i32
    return %c0_i32, %c0_i32_0 : i32, i32
  }
  func.func @transform_2(%arg0: i32) -> (i32, i32) {
    %c0_i32 = arith.constant 0 : i32
    %c0_i32_0 = arith.constant 0 : i32
    %c0_i32_1 = arith.constant 0 : i32
    return %c0_i32, %c0_i32_0 : i32, i32
  }
  func.func @transform_3(%arg0: i32) -> (i32, i32) {
    %c0_i32 = arith.constant 0 : i32
    %c0_i32_0 = arith.constant 0 : i32
    %c0_i32_1 = arith.constant 0 : i32
    return %c0_i32, %c0_i32_0 : i32, i32
  }
  func.func @transform_4(%arg0: i32) -> (i32, i32) {
    %c0_i32 = arith.constant 0 : i32
    %c0_i32_0 = arith.constant 0 : i32
    %c0_i32_1 = arith.constant 0 : i32
    return %c0_i32, %c0_i32_0 : i32, i32
  }
  func.func @transform_5(%arg0: i32) -> (i32, i32) {
    %c0_i32 = arith.constant 0 : i32
    %c0_i32_0 = arith.constant 0 : i32
    %c0_i32_1 = arith.constant 0 : i32
    return %c0_i32, %c0_i32_0 : i32, i32
  }
  func.func @transform_6(%arg0: i32) -> (i32, i32) {
    %c0_i32 = arith.constant 0 : i32
    %c0_i32_0 = arith.constant 0 : i32
    %c0_i32_1 = arith.constant 0 : i32
    return %c0_i32, %c0_i32_0 : i32, i32
  }
  func.func @transform_7(%arg0: i32) -> (i32, i32) {
    %c0_i32 = arith.constant 0 : i32
    %c0_i32_0 = arith.constant 0 : i32
    return %arg0, %c0_i32 : i32, i32
  }
}

</mosaic_0001>

<bundles_post_ra>
// kernel: tpu_custom_call.1
= control target key start
LH: loop header
LB: loop body
LE: loop exit
PB: predicated region body
PF: predicated region fallthrough
CT: control target
= control target key end

     0   :  { %12 = vsyncpa [#allocation3], 0  ;;  %s2191_s0 = inlined_call_operand.hbm [shape: f32[2,1100], index: 0, kind: input, shape index: {}]   ;;  %s2192_s1 = inlined_call_operand.hbm [shape: bf16[1100,256], index: 1, kind: input, shape index: {}]   ;;  %s2193_s2 = inlined_call_operand.vmem [shape: f32[1,256], index: 2, kind: input, shape index: {}]   ;;  %s2194_s3 = inlined_call_operand.hbm [shape: bf16[256,128], index: 3, kind: input, shape index: {}]   ;;  %s2195_s4 = inlined_call_operand.vmem [shape: f32[1,128], index: 4, kind: input, shape index: {}]   ;;  %s2196_s5 = inlined_call_operand.hbm [shape: bf16[128,128], index: 5, kind: input, shape index: {}]   ;;  %s2197_s6 = inlined_call_operand.vmem [shape: f32[1,128], index: 6, kind: input, shape index: {}]   ;;  %s2198_s7 = inlined_call_operand.hbm [shape: f32[2,128], index: 7, kind: output, shape index: {}]  }
   0x1   :  { %13 = vsyncpa [#allocation6], 0 }
   0x2   :  { %14 = vsyncpa [#allocation9], 0 }
   0x3   :  { %15 = vsyncpa [#allocation4], 0  ;;  %s2082_s24 = smov [#allocation5]  }
   0x4   :  { %s31_s25 = sshll.u32 %s2082_s24, 4  ;;  %s32_s25 = int_to_ptr.vmem [resolvable:$true] %s31_s25 }
   0x5   :  { %s1982_s26 = scalar_lea.vmem %s32_s25, 17664  ;;  %p1987_p1 = scmp.lt.s32.totalorder %s32_s25, %s32_s25 }
   0x6   :  { %p1983_p0 = scmp.ne.s32.totalorder %s32_s25, %s1982_s26  ;;  %p1988_p2 = scmp.lt.s32.totalorder %s1982_s26, %s1982_s26 }
   0x8   :  { %p1989_p3 = por %p1988_p2, %p1987_p1 }
   0xa   :  { %p1990_p4 = pnand %p1989_p3, %p1983_p0 }
   0xc   :  { %1993 = shalt.err (!%p1990_p4)
}
   0xd   :  { %s2083_s27 = smov 128   ;;  %s2084_s28 = smov 8  }
   0xe   :  { %37 = dma.hbm_to_vmem [thread:$0]  %s2192_s1, 17664, %s32_s25, [#allocation6], %s2083_s27, %s2083_s27, %s2084_s28  }
   0xf   :  { %s2085_s8 = smov [#allocation2]   ;;  %s2086_s10 = smov [#allocation7]  }
  0x10   :  { %s22_s9 = sshll.u32 %s2085_s8, 4  ;;  %s45_s11 = sshll.u32 %s2086_s10, 4  ;;  %s23_s9 = int_to_ptr.vmem [resolvable:$true] %s22_s9  ;;  %s46_s11 = int_to_ptr.vmem [resolvable:$true] %s45_s11 }
  0x11   :  { %s2002_s12 = scalar_lea.vmem %s23_s9, 288  ;;  %p2007_p6 = scmp.lt.s32.totalorder %s23_s9, %s23_s9 }
  0x12   :  { %p2003_p5 = scmp.ne.s32.totalorder %s23_s9, %s2002_s12  ;;  %p2008_p7 = scmp.lt.s32.totalorder %s2002_s12, %s2002_s12 }
  0x14   :  { %p2009_p8 = por %p2008_p7, %p2007_p6 }
  0x16   :  { %p2010_p9 = pnand %p2009_p8, %p2003_p5 }
  0x18   :  { %2013 = shalt.err (!%p2010_p9)
}
  0x19   :  { %25 = dma.hbm_to_vmem [thread:$0]  %s2191_s0, 288, %s23_s9, [#allocation3]  }
  0x1a   :  { %s2022_s15 = scalar_lea.vmem %s46_s11, 2048  ;;  %p2027_p11 = scmp.lt.s32.totalorder %s46_s11, %s46_s11 }
  0x1b   :  { %p2023_p10 = scmp.ne.s32.totalorder %s46_s11, %s2022_s15  ;;  %p2028_p12 = scmp.lt.s32.totalorder %s2022_s15, %s2022_s15 }
  0x1d   :  { %p2029_p13 = por %p2028_p12, %p2027_p11 }
  0x1f   :  { %p2030_p0 = pnand %p2029_p13, %p2023_p10 }
  0x21   :  { %2033 = shalt.err (!%p2030_p0)
}
  0x22   :  { %s2087_s1 = smov 64   ;;  %s2088_s16 = smov 4  }
  0x23   :  { %51 = dma.hbm_to_vmem [thread:$0]  %s2194_s3, 2048, %s46_s11, [#allocation6], %s2087_s1, %s2087_s1, %s2088_s16  }
  0x24   :  { %s2089_s19 = smov [#allocation8]  }
  0x25   :  { %s59_s20 = sshll.u32 %s2089_s19, 4  ;;  %s60_s20 = int_to_ptr.vmem [resolvable:$true] %s59_s20 }
  0x26   :  { %s2042_s21 = scalar_lea.vmem %s60_s20, 1024  ;;  %p2047_p2 = scmp.lt.s32.totalorder %s60_s20, %s60_s20 }
  0x27   :  { %p2043_p1 = scmp.ne.s32.totalorder %s60_s20, %s2042_s21  ;;  %p2048_p3 = scmp.lt.s32.totalorder %s2042_s21, %s2042_s21 }
  0x29   :  { %p2049_p4 = por %p2048_p3, %p2047_p2 }
  0x2b   :  { %p2050_p5 = pnand %p2049_p4, %p2043_p1 }
  0x2d   :  { %2053 = shalt.err (!%p2050_p5)
}
  0x2e   :  { %65 = dma.hbm_to_vmem [thread:$0]  %s2196_s5, 1024, %s60_s20, [#allocation9], %s2087_s1, %s2087_s1, %s2088_s16  }
  0x2f   :  { %2074 = dma.done.wait [#allocation3], 288  }
  0x30   :  { %2075 = vsyncadd [#allocation3], 4294967008 }
  0x31   :  { %2076 = dma.done.wait [#allocation6], 19712  }
  0x32   :  { %2077 = vsyncadd [#allocation6], 4294947584 }
  0x33   :  { %2078 = dma.done.wait [#allocation9], 1024  }
  0x34   :  { %2079 = vsyncadd [#allocation9], 4294966272  ;;  %v1741_v0 = vld [vmem:[#allocation5 + $0x74] ss:$8 sps:$4 sm:$0xff]   ;;  %v1743_v1 = vld [vmem:[#allocation5 + $0x70] ss:$8 sps:$4 sm:$0xff]   ;;  %v91_v37 = vlaneseq }
  0x35   :  { %995 = vmatprep.subr.bf16.mxu0 %v1741_v0  ;;  %v1744_v2 = vld [vmem:[#allocation5 + $0x174] ss:$8 sps:$4 sm:$0xff]   ;;  %v1746_v3 = vld [vmem:[#allocation5 + $0x170] ss:$8 sps:$4 sm:$0xff]   ;;  %v1747_v4 = vld [vmem:[#allocation5 + $0x64] ss:$8 sps:$4 sm:$0xff]  }
  0x36   :  { %996 = vmatpush1.bf16.msra.mxu0 %v1743_v1  ;;  %v1749_v5 = vld [vmem:[#allocation5 + $0x60] ss:$8 sps:$4 sm:$0xff]   ;;  %1036 = vmatprep.subr.bf16.mxu1 %v1744_v2  ;;  %v1750_v6 = vld [vmem:[#allocation5 + $0x164] ss:$8 sps:$4 sm:$0xff]   ;;  %v1753_v8 = vld [vmem:[#allocation5 + $0x54] ss:$8 sps:$4 sm:$0xff]  }
  0x37   :  { %1037 = vmatpush1.bf16.msra.mxu1 %v1746_v3  ;;  %997 = vmatprep.subr.bf16.mxu0 %v1747_v4  ;;  %v1752_v7 = vld [vmem:[#allocation5 + $0x160] ss:$8 sps:$4 sm:$0xff]   ;;  %v1755_v9 = vld [vmem:[#allocation5 + $0x50] ss:$8 sps:$4 sm:$0xff]   ;;  %v1756_v10 = vld [vmem:[#allocation5 + $0x154] ss:$8 sps:$4 sm:$0xff]  }
  0x38   :  { %1038 = vmatprep.subr.bf16.mxu1 %v1750_v6  ;;  %v1759_v11 = vld [vmem:[#allocation5 + $0x44] ss:$8 sps:$4 sm:$0xff]   ;;  %v1758_v12 = vld [vmem:[#allocation5 + $0x150] ss:$8 sps:$4 sm:$0xff]   ;;  %v1761_v14 = vld [vmem:[#allocation5 + $0x40] ss:$8 sps:$4 sm:$0xff]  }
  0x39   :  { %v1762_v13 = vld [vmem:[#allocation5 + $0x144] ss:$8 sps:$4 sm:$0xff]   ;;  %v1765_v15 = vld [vmem:[#allocation5 + $0x34] ss:$8 sps:$4 sm:$0xff]   ;;  %v1764_v16 = vld [vmem:[#allocation5 + $0x140] ss:$8 sps:$4 sm:$0xff]  }
  0x3a   :  { %998 = vmatpush1.bf16.msra.mxu0 %v1749_v5  ;;  %v1768_v17 = vld [vmem:[#allocation5 + $0x134] ss:$8 sps:$4 sm:$0xff]   ;;  %v1767_v18 = vld [vmem:[#allocation5 + $0x30] ss:$8 sps:$4 sm:$0xff]   ;;  %v1771_v19 = vld [vmem:[#allocation5 + $0x24] ss:$8 sps:$4 sm:$0xff]  }
  0x3b   :  { %999 = vmatprep.subr.bf16.mxu0 %v1753_v8  ;;  %1039 = vmatpush1.bf16.msra.mxu1 %v1752_v7  ;;  %v1770_v20 = vld [vmem:[#allocation5 + $0x130] ss:$8 sps:$4 sm:$0xff]   ;;  %v1774_v21 = vld [vmem:[#allocation5 + $0x124] ss:$8 sps:$4 sm:$0xff]   ;;  %v1773_v22 = vld [vmem:[#allocation5 + $0x20] ss:$8 sps:$4 sm:$0xff]  }
  0x3c   :  { %1040 = vmatprep.subr.bf16.mxu1 %v1756_v10  ;;  %v1777_v23 = vld [vmem:[#allocation5 + $0x14] ss:$8 sps:$4 sm:$0xff]   ;;  %v1776_v24 = vld [vmem:[#allocation5 + $0x120] ss:$8 sps:$4 sm:$0xff]   ;;  %v1779_v26 = vld [vmem:[#allocation5 + $0x10] ss:$8 sps:$4 sm:$0xff]  }
  0x3d   :  { %v1780_v25 = vld [vmem:[#allocation5 + $0x114] ss:$8 sps:$4 sm:$0xff]   ;;  %v1783_v27 = vld [vmem:[#allocation5 + $0x4] ss:$8 sps:$4 sm:$0xff]   ;;  %v1782_v28 = vld [vmem:[#allocation5 + $0x110] ss:$8 sps:$4 sm:$0xff]  }
  0x3e   :  { %1000 = vmatpush1.bf16.msra.mxu0 %v1755_v9  ;;  %v1786_v29 = vld [vmem:[#allocation5 + $0x104] ss:$8 sps:$4 sm:$0xff]   ;;  %v1785_v30 = vld [vmem:[#allocation5] ss:$8 sps:$4 sm:$0xff]   ;;  %v1789_v31 = vld [vmem:[#allocation5 + $0xf4] ss:$8 sps:$4 sm:$0xff]  }
  0x3f   :  { %1001 = vmatprep.subr.bf16.mxu0 %v1759_v11  ;;  %1041 = vmatpush1.bf16.msra.mxu1 %v1758_v12  ;;  %v1788_v32 = vld [vmem:[#allocation5 + $0x100] ss:$8 sps:$4 sm:$0xff]   ;;  %v1792_v33 = vld [vmem:[#allocation5 + $0x1f4] ss:$8 sps:$4 sm:$0xff]   ;;  %v1791_v34 = vld [vmem:[#allocation5 + $0xf0] ss:$8 sps:$4 sm:$0xff]  }
  0x40   :  { %1042 = vmatprep.subr.bf16.mxu1 %v1762_v13  ;;  %v2090_v35 = vmov 1983009808   ;;  %v1795_v38 = vld [vmem:[#allocation5 + $0xe4] ss:$8 sps:$4 sm:$0xff]   ;;  %v1794_v39 = vld [vmem:[#allocation5 + $0x1f0] ss:$8 sps:$4 sm:$0xff]  }
  0x41   :  { %v89_v36 = vunpack.c.l.s4 %v2090_v35  ;;  %v1798_v40 = vld [vmem:[#allocation5 + $0x1e4] ss:$8 sps:$4 sm:$0xff]   ;;  %v1797_v41 = vld [vmem:[#allocation5 + $0xe0] ss:$8 sps:$4 sm:$0xff]   ;;  %v2147_v43 = vshrl.u32 %v91_v37, 7  ;;  %vm988_vm0 = vcmask 1045504  }
  0x42   :  { %1002 = vmatpush1.bf16.msra.mxu0 %v1761_v14  ;;  %v1801_v44 = vld [vmem:[#allocation5 + $0xd4] ss:$8 sps:$4 sm:$0xff]   ;;  %v1800_v45 = vld [vmem:[#allocation5 + $0x1e0] ss:$8 sps:$4 sm:$0xff]   ;;  %v1803_v47 = vld [vmem:[#allocation5 + $0xd0] ss:$8 sps:$4 sm:$0xff]  }
  0x43   :  { %1003 = vmatprep.subr.bf16.mxu0 %v1765_v15  ;;  %1043 = vmatpush1.bf16.msra.mxu1 %v1764_v16  ;;  %v90_v42 = vunpack.c.0.s8 %v89_v36  ;;  %v1804_v46 = vld [vmem:[#allocation5 + $0x1d4] ss:$8 sps:$4 sm:$0xff]   ;;  %v1807_v49 = vld [vmem:[#allocation5 + $0xc4] ss:$8 sps:$4 sm:$0xff]   ;;  %v1806_v50 = vld [vmem:[#allocation5 + $0x1d0] ss:$8 sps:$4 sm:$0xff]  }
  0x44   :  { %1044 = vmatprep.subr.bf16.mxu1 %v1768_v17  ;;  %v1810_v51 = vld [vmem:[#allocation5 + $0x1c4] ss:$8 sps:$4 sm:$0xff]   ;;  %v1809_v53 = vld [vmem:[#allocation5 + $0xc0] ss:$8 sps:$4 sm:$0xff]   ;;  %v1813_v56 = vld [vmem:[#allocation5 + $0xb4] ss:$8 sps:$4 sm:$0xff]  }
  0x45   :  { %v2150_v48 = vsub.s32 %v90_v42, %v2147_v43  ;;  %v81_v52 = vld [vmem:[#allocation2] sm:$0xff]  ;;  %v1812_v57 = vld [vmem:[#allocation5 + $0x1c0] ss:$8 sps:$4 sm:$0xff]   ;;  %vm984_vm1 = vcmask 621568   ;;  %vm2093_vm2 = vmmov 0   ;;  %s2094_s26 = smov [#allocation10]  }
  0x46   :  { %1004 = vmatpush1.bf16.msra.mxu0 %v1767_v18  ;;  %v87_v55 = vcombine.high %v81_v52, %v81_v52  ;;  %v1816_v60 = vld [vmem:[#allocation5 + $0x1b4] ss:$8 sps:$4 sm:$0xff]   ;;  %v1815_v61 = vld [vmem:[#allocation5 + $0xb0] ss:$8 sps:$4 sm:$0xff]   ;;  %v1819_v0 = vld [vmem:[#allocation5 + $0xa4] ss:$8 sps:$4 sm:$0xff]  }
  0x47   :  { %1005 = vmatprep.subr.bf16.mxu0 %v1771_v19  ;;  %1045 = vmatpush1.bf16.msra.mxu1 %v1770_v20  ;;  %v94_v54 = vrot.slane %v81_v52, %v2150_v48  ;;  %v1818_v1 = vld [vmem:[#allocation5 + $0x1b0] ss:$8 sps:$4 sm:$0xff]   ;;  %v1822_v3 = vld [vmem:[#allocation5 + $0x1a4] ss:$8 sps:$4 sm:$0xff]   ;;  %v1821_v4 = vld [vmem:[#allocation5 + $0xa0] ss:$8 sps:$4 sm:$0xff]  }
  0x48   :  { %1046 = vmatprep.subr.bf16.mxu1 %v1774_v21  ;;  %v101_v59 = vrot.slane %v87_v55, %v2150_v48  ;;  %v1825_v5 = vld [vmem:[#allocation5 + $0x94] ss:$8 sps:$4 sm:$0xff]   ;;  %v1824_v6 = vld [vmem:[#allocation5 + $0x1a0] ss:$8 sps:$4 sm:$0xff]   ;;  %v1827_v8 = vld [vmem:[#allocation5 + $0x90] ss:$8 sps:$4 sm:$0xff]  }
  0x49   :  { %v102_v58 = vcombine.high %v94_v54, %v94_v54  ;;  %v1828_v7 = vld [vmem:[#allocation5 + $0x194] ss:$8 sps:$4 sm:$0xff]   ;;  %v1831_v9 = vld [vmem:[#allocation5 + $0x84] ss:$8 sps:$4 sm:$0xff]   ;;  %v1830_v10 = vld [vmem:[#allocation5 + $0x190] ss:$8 sps:$4 sm:$0xff]   ;;  %v137_v15 = vpack.c.bf16 %v94_v54, %v94_v54 }
  0x4a   :  { %1006 = vmatpush1.bf16.msra.mxu0 %v1773_v22  ;;  %v103_v63 = vcombine.high %v101_v59, %v101_v59  ;;  %v1834_v11 = vld [vmem:[#allocation5 + $0x184] ss:$8 sps:$4 sm:$0xff]   ;;  %v1833_v12 = vld [vmem:[#allocation5 + $0x80] ss:$8 sps:$4 sm:$0xff]   ;;  %v1839_v13 = vld [vmem:[#allocation5 + $0x274] ss:$8 sps:$4 sm:$0xff]   ;;  %v139_v18 = vpack.c.bf16 %v101_v59, %v101_v59 }
  0x4b   :  { %1007 = vmatprep.subr.bf16.mxu0 %v1777_v23  ;;  %1047 = vmatpush1.bf16.msra.mxu1 %v1776_v24  ;;  %v138_v62 = vpack.c.bf16 %v102_v58, %v102_v58  ;;  %v1836_v14 = vld [vmem:[#allocation5 + $0x180] ss:$8 sps:$4 sm:$0xff]   ;;  %v1843_v16 = vld [vmem:[#allocation5 + $0x374] ss:$8 sps:$4 sm:$0xff]   ;;  %v1837_v17 = vld [vmem:[#allocation5 + $0x270] ss:$8 sps:$4 sm:$0xff]  }
  0x4c   :  { %1048 = vmatprep.subr.bf16.mxu1 %v1780_v25  ;;  %v140_v2 = vpack.c.bf16 %v103_v63, %v103_v63  ;;  %v1846_v19 = vld [vmem:[#allocation5 + $0x264] ss:$8 sps:$4 sm:$0xff]   ;;  %v1841_v20 = vld [vmem:[#allocation5 + $0x370] ss:$8 sps:$4 sm:$0xff]   ;;  %v1844_v22 = vld [vmem:[#allocation5 + $0x260] ss:$8 sps:$4 sm:$0xff]  }
  0x4d   :  { %1027 = vmatprep.mubr.bf16.mxu0 %v138_v62  ;;  %v1849_v21 = vld [vmem:[#allocation5 + $0x364] ss:$8 sps:$4 sm:$0xff]   ;;  %v1852_v23 = vld [vmem:[#allocation5 + $0x254] ss:$8 sps:$4 sm:$0xff]   ;;  %v1847_v24 = vld [vmem:[#allocation5 + $0x360] ss:$8 sps:$4 sm:$0xff]  }
  0x4e   :  { %1008 = vmatpush1.bf16.msra.mxu0 %v1779_v26  ;;  %1068 = vmatprep.mubr.bf16.mxu1 %v140_v2  ;;  %v1855_v25 = vld [vmem:[#allocation5 + $0x354] ss:$8 sps:$4 sm:$0xff]   ;;  %v1850_v26 = vld [vmem:[#allocation5 + $0x250] ss:$8 sps:$4 sm:$0xff]   ;;  %v1870_v35 = vld [vmem:[#allocation5 + $0x224] ss:$8 sps:$4 sm:$0xff]  }
  0x4f   :  { %1009 = vmatprep.subr.bf16.mxu0 %v1783_v27  ;;  %1049 = vmatpush1.bf16.msra.mxu1 %v1782_v28  ;;  %v1858_v27 = vld [vmem:[#allocation5 + $0x244] ss:$8 sps:$4 sm:$0xff]   ;;  %v1853_v28 = vld [vmem:[#allocation5 + $0x350] ss:$8 sps:$4 sm:$0xff]   ;;  %v1879_v42 = vld [vmem:[#allocation5 + $0x314] ss:$8 sps:$4 sm:$0xff]  }
  0x50   :  { %1050 = vmatprep.subr.bf16.mxu1 %v1786_v29  ;;  %v1861_v29 = vld [vmem:[#allocation5 + $0x344] ss:$8 sps:$4 sm:$0xff]   ;;  %v1865_v36 = vld [vmem:[#allocation5 + $0x330] ss:$8 sps:$4 sm:$0xff]   ;;  %v1880_v55 = vld [vmem:[#allocation5 + $0x200] ss:$8 sps:$4 sm:$0xff]  }
  0x51   :  { %v1873_v37 = vld [vmem:[#allocation5 + $0x324] ss:$8 sps:$4 sm:$0xff]   ;;  %v1886_v59 = vld [vmem:[#allocation5 + $0x2f0] ss:$8 sps:$4 sm:$0xff]   ;;  %v1892_v63 = vld [vmem:[#allocation5 + $0x2e0] ss:$8 sps:$4 sm:$0xff]  }
  0x52   :  { %1010 = vmatpush1.bf16.msra.mxu0 %v1785_v30  ;;  %v1856_v30 = vld [vmem:[#allocation5 + $0x240] ss:$8 sps:$4 sm:$0xff]   ;;  %v1885_v52 = vld [vmem:[#allocation5 + $0x304] ss:$8 sps:$4 sm:$0xff]   ;;  %v1903_v2 = vld [vmem:[#allocation5 + $0x3d4] ss:$8 sps:$4 sm:$0xff]  }
  0x53   :  { %1011 = vmatprep.subr.bf16.mxu0 %v1789_v31  ;;  %1051 = vmatpush1.bf16.msra.mxu1 %v1788_v32  ;;  %v1864_v31 = vld [vmem:[#allocation5 + $0x234] ss:$8 sps:$4 sm:$0xff]   ;;  %v1859_v32 = vld [vmem:[#allocation5 + $0x340] ss:$8 sps:$4 sm:$0xff]   ;;  %v1897_v62 = vld [vmem:[#allocation5 + $0x3e4] ss:$8 sps:$4 sm:$0xff]  }
  0x54   :  { %1052 = vmatprep.subr.bf16.mxu1 %v1792_v33  ;;  %v1867_v33 = vld [vmem:[#allocation5 + $0x334] ss:$8 sps:$4 sm:$0xff]   ;;  %s1499_s27 = sshll.u32 %s2094_s26, 4  ;;  %s1500_s27 = int_to_ptr.vmem [resolvable:$true] %s1499_s27 }
  0x55   :  { %p2059_p7 = scmp.lt.s32.totalorder %s1500_s27, %s1500_s27 }
  0x56   :  { %1012 = vmatpush2.bf16.msra.mxu0 %v1791_v34  ;;  %v1862_v34 = vld [vmem:[#allocation5 + $0x230] ss:$8 sps:$4 sm:$0xff]  }
  0x57   :  { %1013 = vmatprep.subr.bf16.mxu0 %v1795_v38  ;;  %1053 = vmatpush2.bf16.msra.mxu1 %v1794_v39  ;;  %v1868_v38 = vld [vmem:[#allocation5 + $0x220] ss:$8 sps:$4 sm:$0xff]   ;;  %v1876_v39 = vld [vmem:[#allocation5 + $0x214] ss:$8 sps:$4 sm:$0xff]  }
  0x58   :  { %1054 = vmatprep.subr.bf16.mxu1 %v1798_v40  ;;  %v1871_v40 = vld [vmem:[#allocation5 + $0x320] ss:$8 sps:$4 sm:$0xff]  }
  0x5a   :  { %1014 = vmatpush2.bf16.msra.mxu0 %v1797_v41  ;;  %v82_v41 = vld [vmem:[#allocation2 + $0x8] sm:$0xff] }
  0x5b   :  { %1015 = vmatprep.subr.bf16.mxu0 %v1801_v44  ;;  %1055 = vmatpush2.bf16.msra.mxu1 %v1800_v45  ;;  %v2155_v44 = vrot.slane %v82_v41, %v2150_v48  ;;  %v104_v45 = vcombine.high %v82_v41, %v82_v41  ;;  %v1510_v41 = vld.sshfl [vmem:[#allocation2 + $0x10] sm:$0x3 pattern:$0x76325410] }
  0x5c   :  { %1056 = vmatprep.subr.bf16.mxu1 %v1804_v46  ;;  %v1874_v46 = vld [vmem:[#allocation5 + $0x210] ss:$8 sps:$4 sm:$0xff]  }
  0x5e   :  { %1016 = vmatpush2.bf16.msra.mxu0 %v1803_v47  ;;  %v1882_v47 = vld [vmem:[#allocation5 + $0x204] ss:$8 sps:$4 sm:$0xff]  }
  0x5f   :  { %1017 = vmatprep.subr.bf16.mxu0 %v1807_v49  ;;  %1057 = vmatpush2.bf16.msra.mxu1 %v1806_v50  ;;  %v119_v49 = vcombine.high %v2155_v44, %v2155_v44  ;;  %v2160_v50 = vrot.slane %v104_v45, %v2150_v48  ;;  %v1894_v48 = vld [vmem:[#allocation5 + $0x2e4] ss:$8 sps:$4 sm:$0xff]  }
  0x60   :  { %1058 = vmatprep.subr.bf16.mxu1 %v1810_v51  ;;  %v1877_v51 = vld [vmem:[#allocation5 + $0x310] ss:$8 sps:$4 sm:$0xff]   ;;  %v1953_v45 = vld [vmem:[#allocation7 + $0x30] sm:$0xff]  }
  0x61   :  { %v120_v54 = vcombine.high %v2160_v50, %v2160_v50 }
  0x62   :  { %1018 = vmatpush2.bf16.msra.mxu0 %v1809_v53  ;;  %v142_v53 = vpack.c.bf16 %v119_v49, %v119_v49  ;;  %v1956_v49 = vld [vmem:[#allocation7 + $0x60] sm:$0xff]  }
  0x63   :  { %1019 = vmatprep.subr.bf16.mxu0 %v1813_v56  ;;  %1059 = vmatpush2.bf16.msra.mxu1 %v1812_v57  ;;  %v1883_v56 = vld [vmem:[#allocation5 + $0x300] ss:$8 sps:$4 sm:$0xff]   ;;  %v1888_v57 = vld [vmem:[#allocation5 + $0x2f4] ss:$8 sps:$4 sm:$0xff]   ;;  %v144_v58 = vpack.c.bf16 %v120_v54, %v120_v54 }
  0x64   :  { %1060 = vmatprep.subr.bf16.mxu1 %v1816_v60  ;;  %v1891_v60 = vld [vmem:[#allocation5 + $0x3f4] ss:$8 sps:$4 sm:$0xff]   ;;  %v1961_v54 = vld [vmem:[#allocation7 + $0x10] sm:$0xff]  }
  0x66   :  { %1020 = vmatpush2.bf16.msra.mxu0 %v1815_v61  ;;  %v1889_v61 = vld [vmem:[#allocation5 + $0x3f0] ss:$8 sps:$4 sm:$0xff]  }
  0x67   :  { %1021 = vmatprep.subr.bf16.mxu0 %v1819_v0  ;;  %1061 = vmatpush2.bf16.msra.mxu1 %v1818_v1  ;;  %v1900_v0 = vld [vmem:[#allocation5 + $0x2d4] ss:$8 sps:$4 sm:$0xff]   ;;  %v1895_v1 = vld [vmem:[#allocation5 + $0x3e0] ss:$8 sps:$4 sm:$0xff]  }
  0x68   :  { %1062 = vmatprep.subr.bf16.mxu1 %v1822_v3  ;;  %v1898_v3 = vld [vmem:[#allocation5 + $0x2d0] ss:$8 sps:$4 sm:$0xff]  }
  0x6a   :  { %1022 = vmatpush2.bf16.msra.mxu0 %v1821_v4  ;;  %v1906_v4 = vld [vmem:[#allocation5 + $0x2c4] ss:$8 sps:$4 sm:$0xff]  }
  0x6b   :  { %1023 = vmatprep.subr.bf16.mxu0 %v1825_v5  ;;  %1063 = vmatpush2.bf16.msra.mxu1 %v1824_v6  ;;  %v1901_v5 = vld [vmem:[#allocation5 + $0x3d0] ss:$8 sps:$4 sm:$0xff]   ;;  %v1909_v6 = vld [vmem:[#allocation5 + $0x3c4] ss:$8 sps:$4 sm:$0xff]  }
  0x6c   :  { %1064 = vmatprep.subr.bf16.mxu1 %v1828_v7  ;;  %v1904_v7 = vld [vmem:[#allocation5 + $0x2c0] ss:$8 sps:$4 sm:$0xff]  }
  0x6e   :  { %1024 = vmatpush2.bf16.msra.mxu0 %v1827_v8  ;;  %v1912_v8 = vld [vmem:[#allocation5 + $0x2b4] ss:$8 sps:$4 sm:$0xff]  }
  0x6f   :  { %1025 = vmatprep.subr.bf16.mxu0 %v1831_v9  ;;  %1065 = vmatpush2.bf16.msra.mxu1 %v1830_v10  ;;  %v1907_v9 = vld [vmem:[#allocation5 + $0x3c0] ss:$8 sps:$4 sm:$0xff]   ;;  %v1915_v10 = vld [vmem:[#allocation5 + $0x3b4] ss:$8 sps:$4 sm:$0xff]  }
  0x70   :  { %1066 = vmatprep.subr.bf16.mxu1 %v1834_v11  ;;  %v1910_v11 = vld [vmem:[#allocation5 + $0x2b0] ss:$8 sps:$4 sm:$0xff]  }
  0x72   :  { %1026 = vmatpush2.bf16.msra.mxu0 %v1833_v12  ;;  %v1918_v12 = vld [vmem:[#allocation5 + $0x2a4] ss:$8 sps:$4 sm:$0xff]  }
  0x73   :  { %1077 = vmatprep.subr.bf16.mxu0 %v1839_v13  ;;  %1067 = vmatpush2.bf16.msra.mxu1 %v1836_v14  ;;  %v1913_v13 = vld [vmem:[#allocation5 + $0x3b0] ss:$8 sps:$4 sm:$0xff]   ;;  %v1921_v14 = vld [vmem:[#allocation5 + $0x3a4] ss:$8 sps:$4 sm:$0xff]  }
  0x74   :  { %1118 = vmatprep.subr.bf16.mxu1 %v1843_v16  ;;  %v1924_v16 = vld [vmem:[#allocation5 + $0x294] ss:$8 sps:$4 sm:$0xff]  }
  0x75   :  { %1028 = vmatmul.mubr.bf16.vlgmr.msra.gmra.mxu0 %v137_v15  ;;  %v1916_v15 = vld [vmem:[#allocation5 + $0x2a0] ss:$8 sps:$4 sm:$0xff]  }
  0x76   :  { %1078 = vmatpush1.bf16.msra.mxu0 %v1837_v17  ;;  %1069 = vmatmul.mubr.bf16.vlgmr.msra.gmra.mxu1 %v139_v18  ;;  %v1919_v17 = vld [vmem:[#allocation5 + $0x3a0] ss:$8 sps:$4 sm:$0xff]   ;;  %v1927_v18 = vld [vmem:[#allocation5 + $0x394] ss:$8 sps:$4 sm:$0xff]  }
  0x77   :  { %1079 = vmatprep.subr.bf16.mxu0 %v1846_v19  ;;  %1119 = vmatpush1.bf16.msra.mxu1 %v1841_v20  ;;  %v1922_v19 = vld [vmem:[#allocation5 + $0x290] ss:$8 sps:$4 sm:$0xff]   ;;  %v1930_v20 = vld [vmem:[#allocation5 + $0x284] ss:$8 sps:$4 sm:$0xff]  }
  0x78   :  { %1120 = vmatprep.subr.bf16.mxu1 %v1849_v21  ;;  %1109 = vmatprep.mubr.bf16.mxu0 %v142_v53  ;;  %v1925_v21 = vld [vmem:[#allocation5 + $0x390] ss:$8 sps:$4 sm:$0xff]   ;;  %v1960_v53 = vld [vmem:[#allocation7 + $0x50] sm:$0xff]  }
  0x79   :  { %1150 = vmatprep.mubr.bf16.mxu1 %v144_v58  ;;  %v1965_v58 = vld [vmem:[#allocation7] sm:$0xff]  }
  0x7a   :  { %1080 = vmatpush1.bf16.msra.mxu0 %v1844_v22  ;;  %v1933_v22 = vld [vmem:[#allocation5 + $0x384] ss:$8 sps:$4 sm:$0xff]  }
  0x7b   :  { %1081 = vmatprep.subr.bf16.mxu0 %v1852_v23  ;;  %1121 = vmatpush1.bf16.msra.mxu1 %v1847_v24  ;;  %v1928_v23 = vld [vmem:[#allocation5 + $0x280] ss:$8 sps:$4 sm:$0xff]   ;;  %v1934_v24 = vld [vmem:[#allocation5 + $0x444] ss:$8 sps:$4 sm:$0x3f]  }
  0x7c   :  { %1122 = vmatprep.subr.bf16.mxu1 %v1855_v25  ;;  %v1937_v25 = vld [vmem:[#allocation5 + $0x440] ss:$8 sps:$4 sm:$0x3f]  }
  0x7e   :  { %1082 = vmatpush1.bf16.msra.mxu0 %v1850_v26  ;;  %v1931_v26 = vld [vmem:[#allocation5 + $0x380] ss:$8 sps:$4 sm:$0xff]  }
  0x7f   :  { %1083 = vmatprep.subr.bf16.mxu0 %v1858_v27  ;;  %1123 = vmatpush1.bf16.msra.mxu1 %v1853_v28  ;;  %v141_v27 = vpack.c.bf16 %v2155_v44, %v2155_v44  ;;  %v990_v28 = vsel %vm988_vm0, %v1937_v25, 0  ;;  %v1952_v44 = vld [vmem:[#allocation7 + $0x70] sm:$0xff]  }
  0x80   :  { %1124 = vmatprep.subr.bf16.mxu1 %v1861_v29  ;;  %v143_v29 = vpack.c.bf16 %v2160_v50, %v2160_v50  ;;  %v1957_v50 = vld [vmem:[#allocation7 + $0x20] sm:$0xff]  }
  0x82   :  { %1084 = vmatpush1.bf16.msra.mxu0 %v1856_v30  ;;  %v1940_v30 = vld [vmem:[#allocation5 + $0x434] ss:$8 sps:$4 sm:$0xff]  }
  0x83   :  { %1085 = vmatprep.subr.bf16.mxu0 %v1864_v31  ;;  %1125 = vmatpush1.bf16.msra.mxu1 %v1859_v32  ;;  %v1938_v31 = vld [vmem:[#allocation5 + $0x430] ss:$8 sps:$4 sm:$0xff]   ;;  %v2091_v32 = vmov 0  }
  0x84   :  { %1126 = vmatprep.subr.bf16.mxu1 %v1867_v33  ;;  %v1943_v33 = vld [vmem:[#allocation5 + $0x424] ss:$8 sps:$4 sm:$0xff]  }
  0x86   :  { %1086 = vmatpush1.bf16.msra.mxu0 %v1862_v34  ;;  %v1941_v34 = vld [vmem:[#allocation5 + $0x420] ss:$8 sps:$4 sm:$0xff]  }
  0x87   :  { %1087 = vmatprep.subr.bf16.mxu0 %v1870_v35  ;;  %1127 = vmatpush1.bf16.msra.mxu1 %v1865_v36  ;;  %v1946_v35 = vld [vmem:[#allocation5 + $0x414] ss:$8 sps:$4 sm:$0xff]   ;;  %v1950_v36 = vld [vmem:[#allocation7 + $0x78] sm:$0xff]  }
  0x88   :  { %1128 = vmatprep.subr.bf16.mxu1 %v1873_v37  ;;  %v1951_v37 = vld [vmem:[#allocation7 + $0x38] sm:$0xff]  }
  0x8a   :  { %1088 = vmatpush1.bf16.msra.mxu0 %v1868_v38  ;;  %v1944_v38 = vld [vmem:[#allocation5 + $0x410] ss:$8 sps:$4 sm:$0xff]  }
  0x8b   :  { %1089 = vmatprep.subr.bf16.mxu0 %v1876_v39  ;;  %1129 = vmatpush1.bf16.msra.mxu1 %v1871_v40  ;;  %v1949_v39 = vld [vmem:[#allocation5 + $0x404] ss:$8 sps:$4 sm:$0xff]   ;;  %v1947_v40 = vld [vmem:[#allocation5 + $0x400] ss:$8 sps:$4 sm:$0xff]  }
  0x8c   :  { %1130 = vmatprep.subr.bf16.mxu1 %v1879_v42  ;;  %v145_v42 = vpack.c.bf16 %v1510_v41, %v1510_v41 }
  0x8e   :  { %1090 = vmatpush1.bf16.msra.mxu0 %v1874_v46  ;;  %v1954_v46 = vld [vmem:[#allocation7 + $0x68] sm:$0xff]  }
  0x8f   :  { %1091 = vmatprep.subr.bf16.mxu0 %v1882_v47  ;;  %1131 = vmatpush1.bf16.msra.mxu1 %v1877_v51  ;;  %v1955_v47 = vld [vmem:[#allocation7 + $0x28] sm:$0xff]   ;;  %v1958_v51 = vld [vmem:[#allocation7 + $0x58] sm:$0xff]  }
  0x90   :  { %1132 = vmatprep.subr.bf16.mxu1 %v1885_v52  ;;  %v1959_v52 = vld [vmem:[#allocation7 + $0x18] sm:$0xff]  }
  0x92   :  { %1092 = vmatpush1.bf16.msra.mxu0 %v1880_v55  ;;  %v1962_v55 = vld [vmem:[#allocation7 + $0x48] sm:$0xff]  }
  0x93   :  { %1093 = vmatprep.subr.bf16.mxu0 %v1888_v57  ;;  %1133 = vmatpush1.bf16.msra.mxu1 %v1883_v56  ;;  %v1963_v56 = vld [vmem:[#allocation7 + $0x8] sm:$0xff]   ;;  %v1964_v57 = vld [vmem:[#allocation7 + $0x40] sm:$0xff]  }
  0x94   :  { %1134 = vmatprep.subr.bf16.mxu1 %v1891_v60  ;;  %v2092_v60 = vmov 0.0  }
  0x96   :  { %1094 = vmatpush2.bf16.msra.mxu0 %v1886_v59  ;;  %v1966_v59 = vld [vmem:[#allocation8 + $0x38] sm:$0xff]  }
  0x97   :  { %1095 = vmatprep.subr.bf16.mxu0 %v1894_v48  ;;  %1135 = vmatpush2.bf16.msra.mxu1 %v1889_v61  ;;  %v1967_v48 = vld [vmem:[#allocation8 + $0x30] sm:$0xff]   ;;  %v1968_v61 = vld [vmem:[#allocation8 + $0x28] sm:$0xff]  }
  0x98   :  { %1136 = vmatprep.subr.bf16.mxu1 %v1897_v62  ;;  %v1969_v62 = vld [vmem:[#allocation8 + $0x20] sm:$0xff]  }
  0x9a   :  { %1096 = vmatpush2.bf16.msra.mxu0 %v1892_v63  ;;  %v1970_v63 = vld [vmem:[#allocation8 + $0x18] sm:$0xff]  }
  0x9b   :  { %1097 = vmatprep.subr.bf16.mxu0 %v1900_v0  ;;  %1137 = vmatpush2.bf16.msra.mxu1 %v1895_v1  ;;  %v288_v0 = vsub.s32 0, %v2147_v43  ;;  %v284_v1 = vld [vmem:[%s2193_s2] sm:$0x3] }
  0x9c   :  { %1138 = vmatprep.subr.bf16.mxu1 %v1903_v2  ;;  %v292_v2 = vsub.s32 1, %v2147_v43 }
  0x9e   :  { %1098 = vmatpush2.bf16.msra.mxu0 %v1898_v3  ;;  %v289_v3 = vrot.slane %v284_v1, %v288_v0 }
  0x9f   :  { %1099 = vmatprep.subr.bf16.mxu0 %v1906_v4  ;;  %1139 = vmatpush2.bf16.msra.mxu1 %v1901_v5  ;;  %v293_v4 = vrot.slane %v284_v1, %v292_v2 }
  0xa0   :  { %1140 = vmatprep.subr.bf16.mxu1 %v1909_v6 }
  0xa2   :  { %1100 = vmatpush2.bf16.msra.mxu0 %v1904_v7 }
  0xa3   :  { %1101 = vmatprep.subr.bf16.mxu0 %v1912_v8  ;;  %1141 = vmatpush2.bf16.msra.mxu1 %v1907_v9 }
  0xa4   :  { %1142 = vmatprep.subr.bf16.mxu1 %v1915_v10 }
  0xa6   :  { %1102 = vmatpush2.bf16.msra.mxu0 %v1910_v11 }
  0xa7   :  { %1103 = vmatprep.subr.bf16.mxu0 %v1918_v12  ;;  %1143 = vmatpush2.bf16.msra.mxu1 %v1913_v13 }
  0xa8   :  { %1144 = vmatprep.subr.bf16.mxu1 %v1921_v14 }
  0xaa   :  { %1104 = vmatpush2.bf16.msra.mxu0 %v1916_v15 }
  0xab   :  { %1105 = vmatprep.subr.bf16.mxu0 %v1924_v16  ;;  %1145 = vmatpush2.bf16.msra.mxu1 %v1919_v17 }
  0xac   :  { %1146 = vmatprep.subr.bf16.mxu1 %v1927_v18 }
  0xae   :  { %1106 = vmatpush2.bf16.msra.mxu0 %v1922_v19 }
  0xaf   :  { %1107 = vmatprep.subr.bf16.mxu0 %v1930_v20  ;;  %1147 = vmatpush2.bf16.msra.mxu1 %v1925_v21 }
  0xb0   :  { %1148 = vmatprep.subr.bf16.mxu1 %v1933_v22 }
  0xb2   :  { %1108 = vmatpush2.bf16.msra.mxu0 %v1928_v23 }
  0xb3   :  { %1649 = vmatprep.subr.msk.bf16.mxu0 %vm988_vm0, %v1934_v24  ;;  %1149 = vmatpush2.bf16.msra.mxu1 %v1931_v26 }
  0xb4   :  { %1677 = vmatprep.subr.bf16.mxu1 %v1950_v36 }
  0xb5   :  { %1110 = vmatmul.mubr.bf16.vlgmr.msra.gmra.mxu0 %v141_v27 }
  0xb6   :  { %1166 = vmatpush1.bf16.msra.mxu0 %v990_v28  ;;  %1191 = vmatprep.mubr.bf16.mxu0 %v2091_v32 }
  0xb7   :  { %1151 = vmatmul.mubr.bf16.vlgmr.msra.gmra.mxu1 %v143_v29  ;;  %1167 = vmatprep.subr.bf16.mxu0 %v1940_v30 }
  0xb8   :  { %1678 = vmatpush3.bf16.msra.mxu1 %v1951_v37 }
  0xb9   :  { %1679 = vmatprep.subr.bf16.mxu1 %v1952_v44 }
  0xba   :  { %1168 = vmatpush1.bf16.msra.mxu0 %v1938_v31 }
  0xbb   :  { %1169 = vmatprep.subr.bf16.mxu0 %v1943_v33 }
  0xbc   :  { %1680 = vmatpush3.bf16.msra.mxu1 %v1953_v45 }
  0xbd   :  { %1681 = vmatprep.subr.bf16.mxu1 %v1954_v46 }
  0xbe   :  { %1170 = vmatpush1.bf16.msra.mxu0 %v1941_v34 }
  0xbf   :  { %1171 = vmatprep.subr.bf16.mxu0 %v1946_v35 }
  0xc0   :  { %1682 = vmatpush3.bf16.msra.mxu1 %v1955_v47 }
  0xc1   :  { %1683 = vmatprep.subr.bf16.mxu1 %v1956_v49 }
  0xc2   :  { %1172 = vmatpush1.bf16.msra.mxu0 %v1944_v38  ;;  %v1971_v38 = vld [vmem:[#allocation8 + $0x10] sm:$0xff]  }
  0xc3   :  { %1173 = vmatprep.subr.bf16.mxu0 %v1949_v39  ;;  %v1972_v39 = vld [vmem:[#allocation8 + $0x8] sm:$0xff]  }
  0xc4   :  { %1684 = vmatpush3.bf16.msra.mxu1 %v1957_v50 }
  0xc5   :  { %1685 = vmatprep.subr.bf16.mxu1 %v1958_v51 }
  0xc6   :  { %1174 = vmatpush1.bf16.msra.mxu0 %v1947_v40  ;;  %v1973_v40 = vld [vmem:[#allocation8] sm:$0xff]  }
  0xc7   :  { %1708 = vmatprep.subr.bf16.mxu0 %v2092_v60 }
  0xc8   :  { %1686 = vmatpush3.bf16.msra.mxu1 %v1959_v52  ;;  %v1668_v52 = vld [vmem:[%s2197_s6] ss:$0 sm:$0xff] }
  0xc9   :  { %1650 = vmatmul.mubr.msk.bf16.vlgmr.msra.gmra.mxu0 %vm984_vm1, %v145_v42  ;;  %1687 = vmatprep.subr.bf16.mxu1 %v1960_v53  ;;  %v1651_v42 = vld [vmem:[%s2195_s4] ss:$0 sm:$0xff]  ;;  %s2054_s4 = scalar_lea.vmem %s1500_s27, 32 }
  0xca   :  { %1709 = vmatpush3.bf16.msra.mxu0 %v1966_v59  ;;  %1724 = vmatprep.mubr.msk.bf16.mxu0 %vm2093_vm2, %v2092_v60  ;;  %p2055_p6 = scmp.ne.s32.totalorder %s1500_s27, %s2054_s4  ;;  %p2060_p8 = scmp.lt.s32.totalorder %s2054_s4, %s2054_s4 }
  0xcb   :  { %1710 = vmatprep.subr.bf16.mxu0 %v2092_v60 }
  0xcc   :  { %1688 = vmatpush3.bf16.msra.mxu1 %v1961_v54  ;;  %p2061_p9 = por %p2060_p8, %p2059_p7 }
  0xcd   :  { %1689 = vmatprep.subr.bf16.mxu1 %v1962_v55 }
  0xce   :  { %1711 = vmatpush3.bf16.msra.mxu0 %v1967_v48  ;;  %p2062_p10 = pnand %p2061_p9, %p2055_p6 }
  0xcf   :  { %1712 = vmatprep.subr.bf16.mxu0 %v2092_v60 }
  0xd0   :  { %1690 = vmatpush3.bf16.msra.mxu1 %v1963_v56 }
  0xd1   :  { %1691 = vmatprep.subr.bf16.mxu1 %v1964_v57 }
  0xd2   :  { %1713 = vmatpush3.bf16.msra.mxu0 %v1968_v61 }
  0xd3   :  { %1714 = vmatprep.subr.bf16.mxu0 %v2092_v60 }
  0xd4   :  { %1692 = vmatpush3.bf16.msra.mxu1 %v1965_v58 }
  0xd6   :  { %1715 = vmatpush3.bf16.msra.mxu0 %v1969_v62 }
  0xd7   :  { %1716 = vmatprep.subr.bf16.mxu0 %v2092_v60 }
  0xda   :  { %1717 = vmatpush3.bf16.msra.mxu0 %v1970_v63 }
  0xdb   :  { %1718 = vmatprep.subr.bf16.mxu0 %v2092_v60 }
  0xde   :  { %1719 = vmatpush3.bf16.msra.mxu0 %v1971_v38 }
  0xdf   :  { %1720 = vmatprep.subr.bf16.mxu0 %v2092_v60 }
  0xe2   :  { %1721 = vmatpush3.bf16.msra.mxu0 %v1972_v39 }
  0xe3   :  { %1722 = vmatprep.subr.bf16.mxu0 %v2092_v60 }
  0xe6   :  { %1723 = vmatpush3.bf16.msra.mxu0 %v1973_v40 }
 0x135   :  { %v1029_v5 = vpop.f32.mrf.mxu0 }
 0x136   :  { %v1030_v6 = vadd.f32 %v1029_v5, %v289_v3  ;;  %v1070_v8 = vpop.f32.mrf.mxu1 }
 0x137   :  { %v1031_v7 = vpop.f32.mrf.mxu0 }
 0x138   :  { %v1032_v9 = vadd.f32 %v1031_v7, %v293_v4  ;;  %v1071_v10 = vadd.f32 %v1070_v8, %v1030_v6  ;;  %v1072_v12 = vpop.f32.mrf.mxu1 }
 0x139   :  { %v1033_v11 = vpop.f32.mrf.mxu0 }
 0x13a   :  { %v1073_v13 = vadd.f32 %v1072_v12, %v1032_v9  ;;  %v1074_v15 = vpop.f32.mrf.mxu1 }
 0x13b   :  { %v1034_v14 = vpop.f32.mrf.mxu0 }
 0x13c   :  { %v1075_v16 = vpop.f32.mrf.mxu1 }
 0x175   :  { %v1111_v17 = vpop.f32.mrf.mxu0 }
 0x176   :  { %v1112_v24 = vadd.f32 %v1111_v17, %v1071_v10 }
 0x177   :  { %v1113_v18 = vpop.f32.mrf.mxu0  ;;  %v1152_v19 = vpop.f32.mrf.mxu1 }
 0x178   :  { %v1114_v25 = vadd.f32 %v1113_v18, %v1073_v13  ;;  %v1153_v26 = vadd.f32 %v1152_v19, %v1112_v24 }
 0x179   :  { %v1115_v20 = vpop.f32.mrf.mxu0  ;;  %v1154_v21 = vpop.f32.mrf.mxu1 }
 0x17a   :  { %v1155_v28 = vadd.f32 %v1154_v21, %v1114_v25 }
 0x17b   :  { %v1116_v43 = vpop.f32.mrf.mxu0  ;;  %v1156_v22 = vpop.f32.mrf.mxu1 }
 0x17d   :  { %v1157_v23 = vpop.f32.mrf.mxu1 }
 0x189   :  { %v1193_v27 = vpop.f32.mrf.mxu0 }
 0x18a   :  { %v1194_v29 = vadd.f32 %v1193_v27, %v1153_v26 }
 0x18b   :  { %v1195_v30 = vpop.f32.mrf.mxu0 }
 0x18c   :  { %v1196_v31 = vadd.f32 %v1195_v30, %v1155_v28  ;;  %v1200_v32 = vmax.f32 %v1194_v29, 0.0 }
 0x18d   :  { %v1197_v33 = vpop.f32.mrf.mxu0 }
 0x18e   :  { %v1201_v34 = vmax.f32 %v1196_v31, 0.0  ;;  %v1202_v37 = vpack.c.bf16 %v1200_v32, %v1200_v32 }
 0x18f   :  { %v1198_v35 = vpop.f32.mrf.mxu0 }
 0x190   :  { %v1203_v36 = vpack.c.bf16 %v1201_v34, %v1201_v34 }
 0x192   :  { %1371 = vmatprep.mubr.bf16.mxu1 %v1203_v36 }
 0x193   :  { %1372 = vmatmul.mubr.bf16.vlgmr.msra.gmra.mxu1 %v1202_v37 }
 0x253   :  { %v1693_v41 = vpop.f32.mrf.mxu1 }
 0x255   :  { %v1694_v44 = vpop.f32.mrf.mxu1 }
 0x256   :  { %v1695_v45 = vadd.f32 %v1694_v44, %v1693_v41 }
 0x257   :  { %v1696_v46 = vpop.f32.mrf.mxu1 }
 0x258   :  { %v1374_v47 = vadd.f32 %v1695_v45, %v1651_v42 }
 0x259   :  { %v1697_v49 = vpop.f32.mrf.mxu1 }
 0x25a   :  { %v1379_v50 = vmax.f32 %v1374_v47, 0.0 }
 0x25c   :  { %v1380_v51 = vpack.c.bf16 %v1379_v50, %v1379_v50 }
 0x25e   :  { %1725 = vmatmul.mubr.bf16.vlgmr.msra.gmra.mxu0 %v1380_v51 }
 0x31e   :  { %v1486_v53 = vpop.f32.mrf.mxu0 }
 0x31f   :  { %v1487_v54 = vadd.f32 %v1668_v52, %v1486_v53 }
 0x320   :  { %v1726_v55 = vpop.f32.mrf.mxu0 }
 0x321   :  { %1492 = vst [vmem:[#allocation10] sm:$0x3] %v1487_v54 }
 0x322   :  { %v1489_v56 = vpop.f32.mrf.mxu0 }
 0x323   :  { %2065 = shalt.err (!%p2062_p10)
}
 0x324   :  { %1502 = dma.vmem_to_hbm [thread:$0]  %s1500_s27, 32, %s2198_s7, [#allocation4]   ;;  %v1727_v57 = vpop.f32.mrf.mxu0 }
 0x325   :  { %2080 = dma.done.wait [#allocation4], 32  }
 0x326   :  { %2081 = vsyncadd [#allocation4], 4294967264 }
 0x327   :  { %1506 = vsyncpa [#allocation3], 1 }
 0x328   :  { %1507 = vsyncpa [#allocation6], 1 }
 0x329   :  { %1508 = vsyncpa [#allocation9], 1 }
 0x32a   :  { %1509 = vsyncpa [#allocation4], 1 }

</bundles_post_ra>
